<compile_context>
chip_gen: v7x
topology: tpu7x:2x2x1
jax: 0.10.0
libtpu: 0.0.40
codegen_flags: <defaults>
</compile_context>

<pallas_src>
import functools

import jax
import jax.numpy as jnp
import numpy as np
from jax.experimental import pallas as pl
from jax.experimental.pallas import tpu as pltpu


def _patch_gemm_t_kernel(w_ref, p_ref, o_ref):
    # w_ref: (E, K) resident weight, p_ref: (K, TM) patches^T, o_ref: (E, TM).
    # K sits on sublanes (3*p*p is a multiple of 8/16), the M tile on lanes.
    o_ref[...] = jnp.dot(
        w_ref[...], p_ref[...], preferred_element_type=jnp.float32
    ).astype(o_ref.dtype)


def _round_up(x, m):
    return ((x + m - 1) // m) * m


def _choose_tm(Mb, B, K, E, in_itemsize, out_itemsize, tm_max, vmem_budget):
    """Pick the M (lane) tile: 128-aligned, >= ~8 total grid steps, VMEM-safe."""
    if Mb <= 128:
        tm = Mb  # full-extent block (allowed even when not 128-aligned)
    else:
        target_m_steps = max(1, -(-8 // B))          # want B * steps >= ~8
        tm = min(tm_max, Mb,
                 max(128, _round_up(-(-Mb // target_m_steps), 128)))
        tm = max(128, (tm // 128) * 128)

    def blk_bytes(t):
        # double-buffered patches^T + output blocks, plus the resident weight
        return (2 * t * (K * in_itemsize + E * out_itemsize)
                + 2 * E * K * in_itemsize)

    while tm > 128 and blk_bytes(tm) > vmem_budget:
        tm = max(128, ((tm // 2) // 128) * 128)
    return tm, blk_bytes(tm)


def conv_patcher_forward(
    x,
    weight,
    patch_size,
    *,
    out_dtype=None,                 # None -> x.dtype (f32 parity with Conv2d)
    compute_dtype=jnp.bfloat16,     # MXU input dtype; accumulation is f32
    tm_max=2048,
    vmem_budget=32 * 1024 * 1024,   # per-core block budget (v7x-safe)
    min_patches_for_pallas=128,
):
    """x: (B, 3, H, W), weight: (E, 3, p, p) -> (B, E, H//p, W//p)."""
    B, C, H, W = x.shape
    E = weight.shape[0]
    p = patch_size
    Hp, Wp = H // p, W // p
    out_dtype = x.dtype if out_dtype is None else out_dtype
    dn = ("NCHW", "OIHW", "NCHW")

    # Match Conv2d(kernel=stride=p, padding=0): drop trailing partial patches.
    x = x[:, :, : Hp * p, : Wp * p]

    Mb = Hp * Wp          # patches per image
    M = B * Mb            # total patches
    K = C * p * p         # contraction size

    if M < min_patches_for_pallas:
        # Tiny problem: Pallas launch + DMA overhead dominates; let XLA fuse.
        return jax.lax.conv_general_dilated(
            x, weight, (p, p), "VALID", dimension_numbers=dn
        ).astype(out_dtype)

    in_itemsize = jnp.dtype(compute_dtype).itemsize
    out_itemsize = jnp.dtype(out_dtype).itemsize

    # Cast BEFORE the rearrangement pass so the materialized patches^T array is
    # half-width (the GEMM itself is HBM-bound; wrapper traffic dominates).
    # Layout: patches_t[b, c*p*p + kh*p + kw, hp*Wp + wp] = x[b, c, hp*p+kh, wp*p+kw]
    # which matches Conv2d's (c, kh, kw) weight flattening order.
    x6 = x.astype(compute_dtype).reshape(B, C, Hp, p, Wp, p)
    patches_t = jnp.transpose(x6, (0, 1, 3, 5, 2, 4)).reshape(B, K, Mb)
    w_ek = weight.reshape(E, K).astype(compute_dtype)            # (E, K)

    tm, blk_bytes = _choose_tm(Mb, B, K, E, in_itemsize, out_itemsize,
                               tm_max, vmem_budget)

    cost = pl.CostEstimate(
        flops=2 * M * K * E,
        transcendentals=0,
        bytes_accessed=(M * K + E * K) * in_itemsize + M * E * out_itemsize,
    )
    cparams = pltpu.CompilerParams(
        dimension_semantics=("parallel", "parallel"),
        vmem_limit_bytes=int(min(48 * 1024 * 1024,
                                 max(32 * 1024 * 1024, 2 * blk_bytes))),
    )

    # Output laid out as (B, E, Mb): batch is a grid axis, each (E, TM) block is
    # lane-dense, and the final NCHW reshape below is metadata-only (no
    # transpose pass). When Mb % tm != 0 the last M step reads a padded
    # patches^T block (garbage columns enter the MXU) and relies on Pallas
    # masking the out-of-bounds lanes on store — correct, exercised in test 2.
    out = pl.pallas_call(
        _patch_gemm_t_kernel,
        out_shape=jax.ShapeDtypeStruct((B, E, Mb), out_dtype),
        grid=(B, pl.cdiv(Mb, tm)),
        in_specs=[
            pl.BlockSpec((E, K), lambda b, i: (0, 0)),            # resident
            pl.BlockSpec((None, K, tm), lambda b, i: (b, 0, i)),  # streamed
        ],
        out_specs=pl.BlockSpec((None, E, tm), lambda b, i: (b, 0, i)),
        compiler_params=cparams,
        cost_estimate=cost,
    )(w_ek, patches_t)

    return out.reshape(B, E, Hp, Wp)                              # metadata only


def _run_case(key, *, B, H, W, E, p, expect_pallas):
    kx, kw = jax.random.split(key)
    x = jax.random.normal(kx, (B, 3, H, W), dtype=jnp.float32)
    w = jax.random.normal(kw, (E, 3, p, p), dtype=jnp.float32) * 0.02

    fwd = jax.jit(functools.partial(conv_patcher_forward, patch_size=p))
    out = jax.block_until_ready(fwd(x, w))

    dn = ("NCHW", "OIHW", "NCHW")
    ref = jax.lax.conv_general_dilated(x, w, (p, p), "VALID",
                                       dimension_numbers=dn)
    assert out.shape == (B, E, H // p, W // p)
    # Loose check vs true f32 conv (bf16 operand cast is the only deviation).
    np.testing.assert_allclose(np.asarray(out), np.asarray(ref),
                               rtol=2e-2, atol=2e-2)
    if expect_pallas:
        # Tight check vs a reference built from the same bf16-rounded operands.
        xq = x.astype(jnp.bfloat16).astype(jnp.float32)
        wq = w.astype(jnp.bfloat16).astype(jnp.float32)
        refq = jax.lax.conv_general_dilated(xq, wq, (p, p), "VALID",
                                            dimension_numbers=dn)
        np.testing.assert_allclose(np.asarray(out), np.asarray(refq),
                                   rtol=2e-3, atol=2e-3)


if __name__ == "__main__":
    root = jax.random.PRNGKey(0)
    # K = 3*4*4 = 48, Mb = 256 -> Pallas, tiled M axis, grid = (2, 2)
    _run_case(jax.random.fold_in(root, 0),
              B=2, H=64, W=64, E=128, p=4, expect_pallas=True)
    # K = 3*8*8 = 192, Mb = 64 (full-extent / masked-lane M block) -> Pallas
    _run_case(jax.random.fold_in(root, 1),
              B=2, H=64, W=64, E=256, p=8, expect_pallas=True)
    # Tiny M (= 16) -> XLA conv fallback (Pallas overhead not worth it)
    _run_case(jax.random.fold_in(root, 2),
              B=1, H=16, W=16, E=128, p=4, expect_pallas=False)
    print("KERNEL_OK")
</pallas_src>

<mosaic_0001>
module attributes {stable_mosaic.version = 11 : i64} {
  func.func @_patch_gemm_t_kernel(%arg0: i32, %arg1: i32, %arg2: memref<128x48xbf16, #tpu.memory_space<vmem>>, %arg3: memref<1x48x128xbf16, #tpu.memory_space<vmem>>, %arg4: memref<1x128x128xf32, #tpu.memory_space<vmem>>) attributes {dimension_semantics = [#tpu.dimension_semantics<parallel>, #tpu.dimension_semantics<parallel>], iteration_bounds = array<i64: 2, 2>, scalar_prefetch = 0 : i64, scratch_operands = 0 : i64, tpu.core_type = #tpu.core_type<tc>, window_params = [{pipeline_mode = #tpu.pipeline_mode<synchronous>, transform_indices = @transform_0, window_bounds = array<i64: 128, 48>}, {transform_indices = @transform_1, window_bounds = array<i64: 1, 48, 128>}, {transform_indices = @transform_2, window_bounds = array<i64: 1, 128, 128>}]} {
    %c0 = arith.constant 0 : index
    %c0_0 = arith.constant 0 : index
    %0 = vector.load %arg2[%c0, %c0_0] : memref<128x48xbf16, #tpu.memory_space<vmem>>, vector<128x48xbf16>
    %c0_1 = arith.constant 0 : index
    %c0_2 = arith.constant 0 : index
    %c0_3 = arith.constant 0 : index
    %1 = vector.load %arg3[%c0_1, %c0_2, %c0_3] : memref<1x48x128xbf16, #tpu.memory_space<vmem>>, vector<1x48x128xbf16>
    %2 = vector.shape_cast %1 : vector<1x48x128xbf16> to vector<48x128xbf16>
    %cst = arith.constant dense<0.000000e+00> : vector<128x128xf32>
    %3 = tpu.matmul %0, %2, %cst {dimension_numbers = #tpu.dot_dimension_numbers<[1], [0], [0], [1], [0, 0, 1, 1], [], []>} : vector<128x48xbf16>, vector<48x128xbf16>, vector<128x128xf32> -> vector<128x128xf32>
    %c0_4 = arith.constant 0 : index
    %c0_5 = arith.constant 0 : index
    %c0_6 = arith.constant 0 : index
    %4 = vector.load %arg4[%c0_4, %c0_5, %c0_6] : memref<1x128x128xf32, #tpu.memory_space<vmem>>, vector<1x128x128xf32>
    %5 = vector.shape_cast %4 : vector<1x128x128xf32> to vector<128x128xf32>
    %6 = vector.shape_cast %3 : vector<128x128xf32> to vector<1x128x128xf32>
    tpu.vector_store %arg4[%c0_4, %c0_5, %c0_6], %6 {strides = array<i32>} : memref<1x128x128xf32, #tpu.memory_space<vmem>>, vector<1x128x128xf32>,
    return
  }
  func.func @transform_0(%arg0: i32, %arg1: i32) -> (i32, i32) {
    %c0_i32 = arith.constant 0 : i32
    %c0_i32_0 = arith.constant 0 : i32
    %c0_i32_1 = arith.constant 0 : i32
    return %c0_i32, %c0_i32_0 : i32, i32
  }
  func.func @transform_1(%arg0: i32, %arg1: i32) -> (i32, i32, i32) {
    %c0_i32 = arith.constant 0 : i32
    %c0_i32_0 = arith.constant 0 : i32
    return %arg0, %c0_i32, %arg1 : i32, i32, i32
  }
  func.func @transform_2(%arg0: i32, %arg1: i32) -> (i32, i32, i32) {
    %c0_i32 = arith.constant 0 : i32
    %c0_i32_0 = arith.constant 0 : i32
    return %arg0, %c0_i32, %arg1 : i32, i32, i32
  }
}

</mosaic_0001>

<bundles_post_ra>
// kernel: conv_patcher_forward.1
= control target key start
LH: loop header
LB: loop body
LE: loop exit
PB: predicated region body
PF: predicated region fallthrough
CT: control target
= control target key end

     0   :  { %s822_s9 = smov 0   ;;  %s824_s10 = smov 0   ;;  %s988_s0 = inlined_call_operand.vmem [shape: bf16[128,48], index: 0, kind: input, shape index: {}]   ;;  %s989_s1 = inlined_call_operand.vmem [shape: bf16[2,48,256], index: 1, kind: input, shape index: {}]   ;;  %s990_s2 = inlined_call_operand.vmem [shape: f32[2,128,256], index: 2, kind: output, shape index: {}]  }
   0x1   :  { %s826_s11 = smov 0   ;;  %s828_s12 = smov 0  }
   0x2   :  { %s830_s13 = smov 0   ;;  %s832_s14 = smov 0  }
   0x3   :  { %s834_s15 = smov 0  }
   0x4 LB: > { %s21_s16 = sadd.s32 1, %s797_s13  ;;  %s24_s17 = sadd.s32 1, %s801_s14  ;;  %s805_s15 = sphi %s834_s15, %s12_s15   ;;  %s801_s14 = sphi %s832_s14, %s997_s14   ;;  %s797_s13 = sphi %s830_s13, %s996_s13   ;;  %s793_s12 = sphi %s828_s12, %s995_s12   ;;  %s789_s11 = sphi %s826_s11, %s994_s11   ;;  %s785_s10 = sphi %s824_s10, %s993_s10   ;;  %s781_s9 = sphi %s822_s9, %s992_s9  }
   0x5   : > { %p22_p0 = scmp.ge.s32.totalorder %s21_s16, 2  ;;  %s611_s18 = sadd.s32 4294967295, %s805_s15  }
   0x6   : > { %p61_p1 = scmp.ne.s32.totalorder %s785_s10, %s781_s9  ;;  %p62_p2 = scmp.eq.s32.totalorder %s805_s15, 0 }
   0x7   : > { %s999_s16 = smov (%p22_p0, %s21_s16), 0  ;;  %s1001_s17 = smov (!%p22_p0, %s24_s17), %s801_s14 }
   0x8   : > { %p26_p3 = scmp.ge.s32.totalorder %s1001_s17, 2  ;;  %p93_p4 = scmp.eq.s32.totalorder %s611_s18, 3 }
   0x9   : > { %s50_s19 = ssub.s32 %s797_s13, %s999_s16  ;;  %p63_p5 = por %p62_p2, %p61_p1 }
   0xa   : > { %s1003_s17 = smov (%p26_p3, %s1001_s17), 0  ;;  %p870_p6 = por %p93_p4, %p61_p1 }
   0xb   : > { %s49_s21 = ssub.s32 %s801_s14, %s1003_s17  ;;  %s54_s23 = sadd.s32 1, %s785_s10 }
   0xc   : > { %s51_s22 = sor.u32 %s50_s19, %s49_s21  ;;  %p614_p8 = scmp.ge.s32.totalorder %s805_s15, 4 }
   0xd   : > { %p52_p7 = scmp.eq.s32.totalorder %s51_s22, 0 }
   0xe   : > { %118 = sbr.rel (%p614_p8) target bundleno = 32 (0x20), region = 20 }
   0xf   : > { %s878_s24 = scalar_select %p52_p7, %s785_s10, %s54_s23  }
  0x15   : > { %121 = sbr.rel (!%p63_p5) target bundleno = 32 (0x20), region = 24  ;;  %s123_s25 = sand.u32 (%p63_p5), 1, %s785_s10  }
  0x16   : > { %s682_s26 = smul.u32 (%p63_p5), 12, %s801_s14 }
  0x17   : > { %s681_s27 = smul.u32 (%p63_p5), 24, %s123_s25 }
  0x18   : > { %s127_s28 = sadd.s32 (%p63_p5), %s797_s13, %s682_s26 }
  0x19   : > { %s615_s29 = sshll.u32 (%p63_p5), %s127_s28, 2  ;;  %s125_s5 = scalar_lea.vmem (%p63_p5), [#allocation2], %s681_s27 }
  0x1a   : > { %s129_s4 = scalar_lea.vmem (%p63_p5), %s989_s1, %s615_s29 }
  0x1b   : > { %v145_v0 = vld [vmem:[%s129_s4] sm:$0xf] (%p63_p5)  ;;  %v147_v1 = vld [vmem:[%s129_s4 + $0x8] sm:$0xf] (%p63_p5)  ;;  %v149_v2 = vld [vmem:[%s129_s4 + $0x10] sm:$0xf] (%p63_p5) }
  0x1c   : > { %146 = vst [vmem:[%s125_s5] sm:$0xf] %v145_v0  ;;  %148 = vst [vmem:[%s125_s5 + $0x4] sm:$0xf] %v147_v1  ;;  %v151_v3 = vld [vmem:[%s129_s4 + $0x18] sm:$0xf] }
  0x1d   : > { %150 = vst [vmem:[%s125_s5 + $0x8] sm:$0xf] %v149_v2  ;;  %v153_v4 = vld [vmem:[%s129_s4 + $0x20] sm:$0xf]  ;;  %v155_v5 = vld [vmem:[%s129_s4 + $0x28] sm:$0xf] }
  0x1e   : > { %152 = vst [vmem:[%s125_s5 + $0xc] sm:$0xf] %v151_v3  ;;  %154 = vst [vmem:[%s125_s5 + $0x10] sm:$0xf] %v153_v4 }
  0x1f   : > { %156 = vst [vmem:[%s125_s5 + $0x14] sm:$0xf] %v155_v5 }
  0x20 PF: > { %p616_p9 = scmp.ge.s32.totalorder %s805_s15, 1  ;;  %p190_p10 = scmp.lt.s32.totalorder %s805_s15, 5 }
  0x22   : > { %p191_p11 = pnand %p616_p9, %p190_p10 }
  0x23   : > { %s197_s6 = sand.u32 (!%p191_p11), 1, %s781_s9   ;;  %v743_v6 = vld [vmem:[%s988_s0] sm:$0xff] (!%p191_p11)   ;;  %vm298_vm0 = vcmask (!%p191_p11), 392192   ;;  %v745_v11 = vld [vmem:[%s988_s0 + $0x8] sm:$0xff] (!%p191_p11)   ;;  %v747_v13 = vld [vmem:[%s988_s0 + $0x10] sm:$0xff] (!%p191_p11)  }
  0x24   : > { %194 = sbr.rel (%p191_p11) target bundleno = 286 (0x11e), region = 65  ;;  %v744_v7 = vld [vmem:[%s988_s0 + $0x20] sm:$0xff] (!%p191_p11)   ;;  %659 = vmatprep.mubr.msk.bf16.mxu0 (!%p191_p11), %vm298_vm0, %v743_v6  ;;  %v746_v12 = vld [vmem:[%s988_s0 + $0x28] sm:$0xff] (!%p191_p11)   ;;  %v748_v14 = vld [vmem:[%s988_s0 + $0x30] sm:$0xff] (!%p191_p11)  }
  0x25   : > { %s683_s18 = smul.u32 (!%p191_p11), 24, %s197_s6  ;;  %667 = vmatprep.mubr.msk.bf16.mxu1 (!%p191_p11), %vm298_vm0, %v744_v7  ;;  %v749_v15 = vld [vmem:[%s988_s0 + $0x18] sm:$0xff] (!%p191_p11)  }
  0x26   : > { %v750_v16 = vld [vmem:[%s988_s0 + $0x38] sm:$0xff] (!%p191_p11)  }
  0x27   : > { %s199_s22 = scalar_lea.vmem (!%p191_p11), [#allocation2], %s683_s18  ;;  %s617_s18 = sshll.u32 (!%p191_p11), %s197_s6, 7 }
  0x28   : > { %v740_v8 = vld [vmem:[%s199_s22] sm:$0xff] (!%p191_p11)   ;;  %v741_v9 = vld [vmem:[%s199_s22 + $0x8] sm:$0xff] (!%p191_p11)   ;;  %v742_v10 = vld [vmem:[%s199_s22 + $0x10] sm:$0xff] (!%p191_p11)   ;;  %s926_s19 = scalar_lea.vmem (!%p191_p11), [#allocation3], %s617_s18 }
  0x29   : > { %653 = vmatprep.subr.bf16.mxu0 (!%p191_p11), %v740_v8  ;;  %675 = vmatprep.subr.bf16.mxu1 (!%p191_p11), %v740_v8 }
  0x2a   : > { %654 = vmatpush3.bf16.msra.mxu0 (!%p191_p11), %v740_v8  ;;  %678 = vmatpush3.bf16.msra.mxu1 (!%p191_p11), %v740_v8 }
  0x2b   : > { %655 = vmatprep.subr.bf16.mxu0 %v741_v9  ;;  %676 = vmatprep.subr.bf16.mxu1 %v741_v9  ;;  %s638_s9 = sshll.u32 (%p870_p6), %s793_s12, 5 }
  0x2c   : > { %s444_s20 = sadd.s32 (%p870_p6), %s789_s11, %s638_s9 }
  0x2d   : > { %s639_s6 = sshll.u32 (%p870_p6), %s444_s20, 3 }
  0x2e   : > { %656 = vmatpush3.bf16.msra.mxu0 %v741_v9  ;;  %679 = vmatpush3.bf16.msra.mxu1 %v741_v9  ;;  %s446_s23 = scalar_lea.vmem (%p870_p6), %s990_s2, %s639_s6 }
  0x2f   : > { %657 = vmatprep.subr.bf16.mxu0 %v742_v10  ;;  %677 = vmatprep.subr.bf16.mxu1 %v742_v10 }
  0x32   : > { %658 = vmatpush3.bf16.msra.mxu0 %v742_v10  ;;  %680 = vmatpush3.bf16.msra.mxu1 %v742_v10 }
  0x35   : > { %660 = vmatmul.mubr.msk.bf16.vlgmr.msra.gmra.mrb[0].mxu0 %vm298_vm0, %v745_v11  ;;  %668 = vmatmul.mubr.msk.bf16.vlgmr.msra.gmra.mrb[0].mxu1 %vm298_vm0, %v746_v12 }
  0x36   : > { %663 = vmatprep.mubr.msk.bf16.mxu0 %vm298_vm0, %v747_v13  ;;  %671 = vmatprep.mubr.msk.bf16.mxu1 %vm298_vm0, %v748_v14 }
  0x3d   : > { %664 = vmatmul.mubr.msk.bf16.gmra.mrb[4].mxu0 %vm298_vm0, %v749_v15  ;;  %672 = vmatmul.mubr.msk.bf16.gmra.mrb[4].mxu1 %vm298_vm0, %v750_v16 }
 0x108   : > { %v661_v17 = vpop.f32.mrb[0].mxu0  ;;  %v669_v18 = vpop.f32.mrb[0].mxu1 }
 0x109   : > { %422 = vst [vmem:[%s926_s19 + $0x10] sm:$0xff] %v661_v17  ;;  %430 = vst [vmem:[%s926_s19 + $0x50] sm:$0xff] %v669_v18  ;;  %v357_v19 = vpop.f32.mrb[1].mxu0  ;;  %v389_v20 = vpop.f32.mrb[1].mxu1 }
 0x10a   : > { %420 = vst [vmem:[%s926_s19] sm:$0xff] %v357_v19  ;;  %428 = vst [vmem:[%s926_s19 + $0x40] sm:$0xff] %v389_v20  ;;  %v662_v21 = vpop.f32.mrb[2].mxu0  ;;  %v670_v22 = vpop.f32.mrb[2].mxu1 }
 0x10b   : > { %423 = vst [vmem:[%s926_s19 + $0x18] sm:$0xff] %v662_v21  ;;  %431 = vst [vmem:[%s926_s19 + $0x58] sm:$0xff] %v670_v22  ;;  %v360_v23 = vpop.f32.mrb[3].mxu0  ;;  %v392_v24 = vpop.f32.mrb[3].mxu1 }
 0x10c   : > { %421 = vst [vmem:[%s926_s19 + $0x8] sm:$0xff] %v360_v23  ;;  %429 = vst [vmem:[%s926_s19 + $0x48] sm:$0xff] %v392_v24 }
 0x10e   : > { %442 = sbr.rel (!%p870_p6) target bundleno = 286 (0x11e), region = 73 }
 0x110   : > { %v665_v25 = vpop.f32.mrb[4].mxu0  ;;  %v673_v26 = vpop.f32.mrb[4].mxu1  ;;  %v508_v35 = vld [vmem:[%s926_s19 + $0x10] sm:$0xff] (%p870_p6) }
 0x111   : > { %426 = vst [vmem:[%s926_s19 + $0x30] sm:$0xff] %v665_v25  ;;  %434 = vst [vmem:[%s926_s19 + $0x70] sm:$0xff] %v673_v26  ;;  %v373_v27 = vpop.f32.mrb[5].mxu0  ;;  %v405_v28 = vpop.f32.mrb[5].mxu1  ;;  %v504_v33 = vld [vmem:[%s926_s19] sm:$0xff] (%p870_p6)  ;;  %v524_v43 = vld [vmem:[%s926_s19 + $0x50] sm:$0xff] (%p870_p6) }
 0x112   : > { %424 = vst [vmem:[%s926_s19 + $0x20] sm:$0xff] %v373_v27  ;;  %432 = vst [vmem:[%s926_s19 + $0x60] sm:$0xff] %v405_v28  ;;  %v666_v29 = vpop.f32.mrb[6].mxu0  ;;  %v674_v30 = vpop.f32.mrb[6].mxu1  ;;  %v510_v36 = vld [vmem:[%s926_s19 + $0x18] sm:$0xff] (%p870_p6)  ;;  %v520_v41 = vld [vmem:[%s926_s19 + $0x40] sm:$0xff] (%p870_p6) }
 0x113   : > { %427 = vst [vmem:[%s926_s19 + $0x38] sm:$0xff] %v666_v29  ;;  %435 = vst [vmem:[%s926_s19 + $0x78] sm:$0xff] %v674_v30  ;;  %v376_v31 = vpop.f32.mrb[7].mxu0  ;;  %v408_v32 = vpop.f32.mrb[7].mxu1  ;;  %v506_v34 = vld [vmem:[%s926_s19 + $0x8] sm:$0xff] (%p870_p6)  ;;  %v526_v44 = vld [vmem:[%s926_s19 + $0x58] sm:$0xff] (%p870_p6) }
 0x114   : > { %425 = vst [vmem:[%s926_s19 + $0x28] sm:$0xff] %v376_v31  ;;  %433 = vst [vmem:[%s926_s19 + $0x68] sm:$0xff] %v408_v32  ;;  %v522_v42 = vld [vmem:[%s926_s19 + $0x48] sm:$0xff] (%p870_p6) }
 0x115   : > { %505 = vst [vmem:[%s446_s23] sm:$0xff] %v504_v33  ;;  %507 = vst [vmem:[%s446_s23 + $0x10] sm:$0xff] %v506_v34 }
 0x116   : > { %509 = vst [vmem:[%s446_s23 + $0x20] sm:$0xff] %v508_v35  ;;  %511 = vst [vmem:[%s446_s23 + $0x30] sm:$0xff] %v510_v36 }
 0x117   : > { %521 = vst [vmem:[%s446_s23 + $0x80] sm:$0xff] %v520_v41  ;;  %523 = vst [vmem:[%s446_s23 + $0x90] sm:$0xff] %v522_v42 }
 0x118   : > { %v516_v39 = vld [vmem:[%s926_s19 + $0x30] sm:$0xff]  ;;  %525 = vst [vmem:[%s446_s23 + $0xa0] sm:$0xff] %v524_v43  ;;  %527 = vst [vmem:[%s446_s23 + $0xb0] sm:$0xff] %v526_v44 }
 0x119   : > { %v512_v37 = vld [vmem:[%s926_s19 + $0x20] sm:$0xff]  ;;  %517 = vst [vmem:[%s446_s23 + $0x60] sm:$0xff] %v516_v39  ;;  %v532_v47 = vld [vmem:[%s926_s19 + $0x70] sm:$0xff] }
 0x11a   : > { %v518_v40 = vld [vmem:[%s926_s19 + $0x38] sm:$0xff]  ;;  %513 = vst [vmem:[%s446_s23 + $0x40] sm:$0xff] %v512_v37  ;;  %v528_v45 = vld [vmem:[%s926_s19 + $0x60] sm:$0xff]  ;;  %533 = vst [vmem:[%s446_s23 + $0xe0] sm:$0xff] %v532_v47 }
 0x11b   : > { %v514_v38 = vld [vmem:[%s926_s19 + $0x28] sm:$0xff]  ;;  %519 = vst [vmem:[%s446_s23 + $0x70] sm:$0xff] %v518_v40  ;;  %529 = vst [vmem:[%s446_s23 + $0xc0] sm:$0xff] %v528_v45  ;;  %v534_v48 = vld [vmem:[%s926_s19 + $0x78] sm:$0xff] }
 0x11c   : > { %515 = vst [vmem:[%s446_s23 + $0x50] sm:$0xff] %v514_v38  ;;  %v530_v46 = vld [vmem:[%s926_s19 + $0x68] sm:$0xff]  ;;  %535 = vst [vmem:[%s446_s23 + $0xf0] sm:$0xff] %v534_v48 }
 0x11d   : > { %531 = vst [vmem:[%s446_s23 + $0xd0] sm:$0xff] %v530_v46 }
 0x11e PF: > { %s12_s15 = sadd.s32 1, %s805_s15   ;;  %s992_s9 = smov %s785_s10 }
 0x11f   : > { %p9_p12 = scmp.ge.s32.totalorder %s12_s15, 6   ;;  %s993_s10 = smov %s878_s24 }
 0x120   : > { %s994_s11 = smov %s797_s13  ;;  %s995_s12 = smov %s801_s14 }
 0x121   : > { %s996_s13 = smov %s999_s16  ;;  %s997_s14 = smov %s1003_s17 }
 0x122   :  { %11 = sbr.rel (!%p9_p12) target bundleno = 4 (0x4), region = 142 }

</bundles_post_ra>
